<compile_context>
chip_gen: v5e
topology: v5e:2x2
jax: 0.10.0
libtpu: 0.0.40
codegen_flags: <defaults>
</compile_context>

<pallas_src>
import jax
import jax.numpy as jnp
from jax.experimental import pallas as pl
from jax.experimental.pallas import tpu as pltpu


def _embedding_kernel(idx_ref, table_ref, out_ref):
    # idx_ref:   (TL, 1) int32   indices into the embedding table
    # table_ref: (N, H)  float32 embedding weights (resident across grid steps)
    # out_ref:   (TL, H) float32 gathered embeddings
    idx = idx_ref[...]                                       # (TL, 1)
    TL = idx.shape[0]
    N = table_ref.shape[0]
    # one-hot(idx) via iota compare on the VPU (broadcast (TL,1) == (TL,N))
    col = jax.lax.broadcasted_iota(jnp.int32, (TL, N), 1)
    one_hot = (col == idx).astype(table_ref.dtype)
    # gather == one_hot @ table on the MXU; HIGHEST precision keeps the f32
    # table exact (multi-pass), so the result equals a true gather bit-for-bit.
    out_ref[...] = jnp.dot(
        one_hot,
        table_ref[...],
        preferred_element_type=jnp.float32,
        precision=jax.lax.Precision.HIGHEST,
    ).astype(out_ref.dtype)


def positional_embedding(x, table, *, max_tile=2048, vmem_budget_bytes=8 << 20):
    """x: (B, S) integer indices; table: (n_datasets, hidden_dim) float32."""
    B, S = x.shape
    N, H = table.shape
    L = B * S
    itemsize = jnp.dtype(table.dtype).itemsize

    # Per-token-row VMEM footprint inside the kernel:
    #   one-hot row (N f32) + double-buffered out row (2*H elems) + idx + slack.
    bytes_per_row = 4 * N + 2 * H * itemsize + 8
    tl_cap = max(8, (vmem_budget_bytes // bytes_per_row) // 8 * 8)
    TL = min(max_tile, tl_cap, ((L + 7) // 8) * 8)   # multiple of 8 (sublane)
    Lp = ((L + TL - 1) // TL) * TL                   # pad L to whole tiles

    idx_flat = x.reshape(L).astype(jnp.int32)
    if Lp != L:
        idx_flat = jnp.pad(idx_flat, (0, Lp - L))    # pad with index 0 (valid row)
    idx2d = idx_flat.reshape(Lp, 1)

    # Explicit VMEM limit: resident table + tile working set + headroom,
    # clamped to [32 MiB, 64 MiB] (64 MiB = v7x physical VMEM per TC).
    table_bytes = N * H * itemsize
    vmem_needed = table_bytes + TL * bytes_per_row + (2 << 20)
    vmem_limit = int(min(64 << 20, max(32 << 20, vmem_needed)))

    out = pl.pallas_call(
        _embedding_kernel,
        out_shape=jax.ShapeDtypeStruct((Lp, H), table.dtype),
        grid=(Lp // TL,),
        in_specs=[
            pl.BlockSpec((TL, 1), lambda i: (i, 0)),   # index tile, pipelined
            pl.BlockSpec((N, H), lambda i: (0, 0)),    # table resident in VMEM
        ],
        out_specs=pl.BlockSpec((TL, H), lambda i: (i, 0)),  # lane-dense out tile
        compiler_params=pltpu.CompilerParams(
            dimension_semantics=("parallel",),   # shard L across TCs on v7x
            vmem_limit_bytes=vmem_limit,
        ),
        cost_estimate=pl.CostEstimate(
            flops=2 * Lp * N * H,
            transcendentals=0,
            bytes_accessed=Lp * H * itemsize + N * H * itemsize + Lp * 4,
        ),
    )(idx2d, table)

    if Lp != L:
        out = out[:L]
    return out.reshape(B, S, H)


if __name__ == "__main__":
    # Config (synthetic, deterministic): n_datasets=16, hidden_dim=128
    n_datasets = 16
    hidden_dim = 128
    batch, seq = 2, 8

    key = jax.random.PRNGKey(0)
    k_w, k_x = jax.random.split(key)

    # nn.Embedding default init: weight ~ N(0, 1)
    pe_weight = jax.random.normal(k_w, (n_datasets, hidden_dim), dtype=jnp.float32)
    # integer dataset indices, shape (B, S)
    x = jax.random.randint(k_x, (batch, seq), 0, n_datasets, dtype=jnp.int32)

    out = positional_embedding(x, pe_weight)
    out = jax.block_until_ready(out)

    # reference check against plain-JAX embedding lookup
    ref = jnp.take(pe_weight, x, axis=0)
    assert out.shape == (batch, seq, hidden_dim)
    assert out.dtype == jnp.float32
    assert jnp.allclose(out, ref, atol=1e-6), "mismatch vs reference gather"

    print("KERNEL_OK")
</pallas_src>

<mosaic_0001>
module attributes {stable_mosaic.version = 11 : i64} {
  func.func @_embedding_kernel(%arg0: i32, %arg1: memref<16x1xi32, #tpu.memory_space<vmem>>, %arg2: memref<16x128xf32, #tpu.memory_space<vmem>>, %arg3: memref<16x128xf32, #tpu.memory_space<vmem>>) attributes {dimension_semantics = [#tpu.dimension_semantics<parallel>], iteration_bounds = array<i64: 1>, scalar_prefetch = 0 : i64, scratch_operands = 0 : i64, tpu.core_type = #tpu.core_type<tc>, window_params = [{transform_indices = @transform_0, window_bounds = array<i64: 16, 1>}, {pipeline_mode = #tpu.pipeline_mode<synchronous>, transform_indices = @transform_1, window_bounds = array<i64: 16, 128>}, {transform_indices = @transform_2, window_bounds = array<i64: 16, 128>}]} {
    %c0 = arith.constant 0 : index
    %c0_0 = arith.constant 0 : index
    %0 = vector.load %arg1[%c0, %c0_0] : memref<16x1xi32, #tpu.memory_space<vmem>>, vector<16x1xi32>
    %1 = tpu.iota {dimensions = array<i32: 1>} : vector<16x16xi32>
    %2 = vector.broadcast %0 : vector<16x1xi32> to vector<16x16xi32>
    %3 = arith.cmpi eq, %1, %2 : vector<16x16xi32>
    %4 = arith.extui %3 : vector<16x16xi1> to vector<16x16xi32>
    %5 = arith.sitofp %4 : vector<16x16xi32> to vector<16x16xf32>
    %c0_1 = arith.constant 0 : index
    %c0_2 = arith.constant 0 : index
    %6 = vector.load %arg2[%c0_1, %c0_2] : memref<16x128xf32, #tpu.memory_space<vmem>>, vector<16x128xf32>
    %cst = arith.constant dense<0.000000e+00> : vector<16x128xf32>
    %7 = tpu.matmul %5, %6, %cst {dimension_numbers = #tpu.dot_dimension_numbers<[1], [0], [0], [1], [0, 0, 1, 1], [], []>, precision = #tpu.contract_precision<fp32>} : vector<16x16xf32>, vector<16x128xf32>, vector<16x128xf32> -> vector<16x128xf32>
    %c0_3 = arith.constant 0 : index
    %c0_4 = arith.constant 0 : index
    %8 = vector.load %arg3[%c0_3, %c0_4] : memref<16x128xf32, #tpu.memory_space<vmem>>, vector<16x128xf32>
    tpu.vector_store %arg3[%c0_3, %c0_4], %7 {strides = array<i32>} : memref<16x128xf32, #tpu.memory_space<vmem>>, vector<16x128xf32>,
    return
  }
  func.func @transform_0(%arg0: i32) -> (i32, i32) {
    %c0_i32 = arith.constant 0 : i32
    %c0_i32_0 = arith.constant 0 : i32
    return %arg0, %c0_i32 : i32, i32
  }
  func.func @transform_1(%arg0: i32) -> (i32, i32) {
    %c0_i32 = arith.constant 0 : i32
    %c0_i32_0 = arith.constant 0 : i32
    %c0_i32_1 = arith.constant 0 : i32
    return %c0_i32, %c0_i32_0 : i32, i32
  }
  func.func @transform_2(%arg0: i32) -> (i32, i32) {
    %c0_i32 = arith.constant 0 : i32
    %c0_i32_0 = arith.constant 0 : i32
    return %arg0, %c0_i32 : i32, i32
  }
}

</mosaic_0001>

<bundles_post_ra>
// kernel: tpu_custom_call.1
= control target key start
LH: loop header
LB: loop body
LE: loop exit
PB: predicated region body
PF: predicated region fallthrough
CT: control target
= control target key end

     0   :  { %v291_v2 = vmov 0   ;;  %s334_s0 = inlined_call_operand.vmem [shape: s32[16,1], index: 0, kind: input, shape index: {}]   ;;  %s335_s1 = inlined_call_operand.vmem [shape: f32[16,128], index: 1, kind: input, shape index: {}]   ;;  %s336_s2 = inlined_call_operand.hbm [shape: f32[16,128], index: 2, kind: output, shape index: {}]  }
   0x1   :  { %v13_v0 = vld [vmem:[%s334_s0 + $0x8] sm:$0xff]  ;;  %264 = vset.pattern.permute.xlu0 %v291_v2 }
   0x2   :  { %v29_v1 = vld [vmem:[%s335_s1 + $0x8] sm:$0xff] }
   0x3   :  { %v51_v3 = vand.u32 4294901760, %v29_v1 }
   0x4   :  { %7 = vsyncpa [#allocation3], 0  ;;  %20 = vperm.xlu0 %264, %v13_v0   ;;  %v12_v6 = vld [vmem:[%s334_s0] sm:$0xff]  ;;  %v14_v15 = vlaneseq  ;;  %vm30_vm0 = vcmask 130048   ;;  %v292_v18 = vmov 0.0   ;;  %s293_s0 = smov [#allocation2]  }
   0x5   :  { %v87_v4 = vsub.f32 %v29_v1, %v51_v3  ;;  %255 = vmatpush.msra.mxu2 %v51_v3  ;;  %52 = vmatpush.msra.mxu0 %v51_v3  ;;  %v28_v9 = vld [vmem:[%s335_s1] sm:$0xff]  ;;  %s233_s1 = sshll.u32 %s293_s0, 4  ;;  %s235_s19 = sshll.u32 %s336_s2, 4  ;;  %s234_s1 = int_to_ptr.vmem [resolvable:$true] %s233_s1  ;;  %s236_s19 = int_to_ptr.hbm [resolvable:$true] %s235_s19 }
   0x6   :  { %v53_v10 = vand.u32 4294901760, %v28_v9  ;;  %v15_v16 = vand.u32 127, %v14_v15  ;;  %s294_s20 = smov 128   ;;  %s295_s21 = smov 8  }
   0x7   :  { %v88_v5 = vand.u32 4294901760, %v87_v4 }
   0x8   :  { %v93_v11 = vsub.f32 %v28_v9, %v53_v10  ;;  %256 = vmatpush.msra.mxu2 %v53_v10  ;;  %54 = vmatpush.msra.mxu0 %v53_v10 }
   0x9   :  { %v89_v7 = vsub.f32 %v87_v4, %v88_v5 }
   0xa   :  { %123 = vmatpush.msrb.mxu2 %v87_v4  ;;  %186 = vmatpush.msrb.mxu0 %v88_v5  ;;  %v94_v12 = vand.u32 4294901760, %v93_v11 }
   0xb   :  { %v90_v8 = vand.u32 4294901760, %v89_v7 }
   0xc   :  { %17 = vperm.xlu0 %264, %v12_v6   ;;  %126 = vmatpush.msrb.mxu2 %v93_v11  ;;  %v95_v13 = vsub.f32 %v93_v11, %v94_v12 }
   0xd   :  { %257 = vmatpush.msra.mxu3 %v90_v8  ;;  %91 = vmatpush.msra.mxu1 %v90_v8 }
   0xe   :  { %190 = vmatpush.msrb.mxu0 %v94_v12  ;;  %v96_v14 = vand.u32 4294901760, %v95_v13 }
  0x10   :  { %258 = vmatpush.msra.mxu3 %v96_v14  ;;  %97 = vmatpush.msra.mxu1 %v96_v14 }
  0x12   :  { %153 = vmatpush.msrb.mxu3 %v51_v3  ;;  %215 = vmatpush.msrb.mxu1 %v51_v3 }
  0x14   :  { %155 = vmatpush.msrb.mxu3 %v53_v10  ;;  %217 = vmatpush.msrb.mxu1 %v53_v10 }
  0x76   :  { %v21_v17 = vpop.permute.xlu0 %20 }
  0x77   :  { %vm23_vm1 = vcmp.eq.s32.totalorder %v15_v16, %v21_v17 }
  0x78   :  { %v248_v19 = vsel %vm23_vm1, 1.0, %v292_v18 }
  0x79   :  { %v35_v20 = vsel %vm30_vm0, %v248_v19, 0  ;;  %250 = vmatmul.msk.f32.vlgmr.msra.gmra.mxu3 %vm30_vm0, %v248_v19 }
  0x7a   :  { %v64_v21 = vsub.f32 %v35_v20, %v35_v20 }
  0x7c   :  { %v65_v22 = vand.u32 4294901760, %v64_v21 }
  0x7e   :  { %v18_v23 = vpop.permute.xlu0 %17  ;;  %v66_v24 = vsub.f32 %v64_v21, %v65_v22 }
  0x7f   :  { %vm22_vm2 = vcmp.eq.s32.totalorder %v15_v16, %v18_v23 }
  0x80   :  { %v247_v25 = vsel %vm22_vm2, 1.0, %v292_v18  ;;  %v67_v26 = vand.u32 4294901760, %v66_v24 }
  0x81   :  { %v32_v27 = vsel %vm30_vm0, %v247_v25, 0  ;;  %249 = vmatmul.msk.f32.vlgmr.msra.gmra.mxu1 %vm30_vm0, %v247_v25 }
  0x82   :  { %v56_v28 = vsub.f32 %v32_v27, %v32_v27  ;;  %68 = vmatmul.f32.vlgmr.msra.gmra.mxu2 %v67_v26 }
  0x84   :  { %v57_v29 = vand.u32 4294901760, %v56_v28 }
  0x86   :  { %159 = vmatmul.f32.vlgmr.msrb.gmra.mxu3 %v57_v29  ;;  %v58_v30 = vsub.f32 %v56_v28, %v57_v29 }
  0x88   :  { %v59_v31 = vand.u32 4294901760, %v58_v30 }
  0x89   :  { %253 = vmatmul.msk.f32.vlgmr.msrb.gmra.mxu1 %vm30_vm0, %v247_v25 }
  0x8a   :  { %60 = vmatmul.f32.vlgmr.msra.gmra.mxu0 %v59_v31  ;;  %129 = vmatmul.f32.vlgmr.msrb.gmra.mxu2 %v56_v28 }
  0x8e   :  { %165 = vmatmul.f32.gmra.mxu3 %v65_v22 }
  0x91   :  { %254 = vmatmul.msk.f32.gmra.mxu1 %vm30_vm0, %v248_v19 }
  0x92   :  { %134 = vmatmul.f32.gmra.mxu2 %v64_v21  ;;  %251 = vmatmul.msk.f32.vlgmr.msrb.gmra.mxu0 %vm30_vm0, %v247_v25 }
  0x9a   :  { %252 = vmatmul.msk.f32.gmra.mxu0 %vm30_vm0, %v248_v19 }
  0xfc   :  { %v104_v32 = vpop.f32.mrf.mxu3 }
  0xfe   :  { %v100_v34 = vpop.f32.mrf.mxu1 }
 0x105   :  { %v69_v33 = vpop.f32.mrf.mxu2 }
 0x106   :  { %v220_v42 = vpop.f32.mrf.mxu1  ;;  %v105_v44 = vadd.f32 %v104_v32, %v69_v33 }
 0x107   :  { %v61_v35 = vpop.f32.mrf.mxu0 }
 0x108   :  { %v101_v36 = vadd.f32 %v100_v34, %v61_v35 }
 0x109   :  { %v160_v37 = vpop.f32.mrf.mxu3 }
 0x10d   :  { %v130_v38 = vpop.f32.mrf.mxu2 }
 0x10e   :  { %v131_v39 = vadd.f32 %v130_v38, %v101_v36  ;;  %v224_v52 = vpop.f32.mrf.mxu1 }
 0x10f   :  { %v193_v40 = vpop.f32.mrf.mxu0 }
 0x110   :  { %v161_v41 = vadd.f32 %v160_v37, %v131_v39 }
 0x111   :  { %v166_v48 = vpop.f32.mrf.mxu3 }
 0x112   :  { %v194_v43 = vadd.f32 %v193_v40, %v161_v41 }
 0x114   :  { %v221_v45 = vadd.f32 %v220_v42, %v194_v43 }
 0x115   :  { %v135_v46 = vpop.f32.mrf.mxu2 }
 0x116   :  { %227 = vst [vmem:[#allocation2] sm:$0xff] %v221_v45  ;;  %v136_v47 = vadd.f32 %v135_v46, %v105_v44 }
 0x117   :  { %v197_v50 = vpop.f32.mrf.mxu0 }
 0x118   :  { %v167_v49 = vadd.f32 %v166_v48, %v136_v47 }
 0x11a   :  { %v198_v51 = vadd.f32 %v197_v50, %v167_v49 }
 0x11c   :  { %v225_v53 = vadd.f32 %v224_v52, %v198_v51 }
 0x11e   :  { %228 = vst [vmem:[#allocation2 + $0x8] sm:$0xff] %v225_v53 }
 0x11f   :  { %241 = dma.vmem_to_hbm [thread:$0]  %s234_s1, 256, %s236_s19, [#allocation3], %s294_s20, %s294_s20, %s295_s21  }
 0x120   :  { %289 = dma.done.wait [#allocation3], 256  }
 0x121   :  { %290 = vsyncadd [#allocation3], 4294967040 }
 0x122   :  { %246 = vsyncpa [#allocation3], 1 }

</bundles_post_ra>
